<compile_context>
chip_gen: v6e
topology: v6e:2x2x1
jax: 0.10.0
libtpu: 0.0.40
codegen_flags: <defaults>
</compile_context>

<pallas_src>
import jax
import jax.numpy as jnp
from jax.experimental import pallas as pl
from jax.experimental.pallas import tpu as pltpu


def _round_up(x: int, m: int) -> int:
    return (x + m - 1) // m * m


def critic_kernel(s_ref, a_ref, w1s_ref, w1a_ref, b1_ref, w2_ref, b2_ref,
                  w3_ref, b3_ref, o_ref):
    # Layer 1 with the concat fused away:
    #   cat([s, a], 1) @ W1  ==  s @ W1[:s_dim] + a @ W1[s_dim:]
    h1 = jnp.dot(s_ref[...], w1s_ref[...], preferred_element_type=jnp.float32)
    h1 = h1 + jnp.dot(a_ref[...], w1a_ref[...], preferred_element_type=jnp.float32)
    h1 = jnp.maximum(h1 + b1_ref[...], 0.0)

    # Layer 2 (H -> H) on the MXU.
    h2 = jnp.dot(h1, w2_ref[...], preferred_element_type=jnp.float32) + b2_ref[...]
    h2 = jnp.maximum(h2, 0.0)

    # Layer 3 (H -> 1): VPU multiply + XLU cross-lane reduce keeps the MXU free
    # and avoids a 1-lane matmul result. w3 arrives as a (1, H) row, b3 is an
    # SMEM scalar.
    o_ref[...] = jnp.sum(h2 * w3_ref[...], axis=-1, keepdims=True) + b3_ref[0, 0]


def critic_forward(s, a, params, *, s_dim, a_dim, tile_b=1024):
    """Pallas implementation of Critic.forward.

    s: (..., s_dim) -> viewed as (B, s_dim)
    a: (..., a_dim) -> viewed as (B, a_dim)
    returns (B, 1) float32
    """
    w1, b1, w2, b2, w3, b3 = params

    s2 = s.reshape(-1, s_dim).astype(jnp.float32)
    a2 = a.reshape(-1, a_dim).astype(jnp.float32)
    B = s2.shape[0]
    H = w1.shape[1]

    # Split W1 so the concatenated features never materialize in HBM.
    w1s = w1[:s_dim].astype(jnp.float32)          # (s_dim, H)
    w1a = w1[s_dim:].astype(jnp.float32)          # (a_dim, H)
    b1r = b1.reshape(1, H).astype(jnp.float32)
    w2f = w2.astype(jnp.float32)                  # (H, H)
    b2r = b2.reshape(1, H).astype(jnp.float32)
    w3r = w3.reshape(1, H).astype(jnp.float32)    # (1, H) row for the VPU reduce
    b3s = b3.reshape(1, 1).astype(jnp.float32)    # scalar, lives in SMEM

    # Large batch tiles amortize per-grid-step overhead; clamp so tiny batches
    # aren't padded to a huge tile. Per-tile VMEM is ~tile_b * 200 B, so the
    # default 1024 (and far larger) fits comfortably on v5e/v6e/v7x.
    tile_b = max(8, min(_round_up(tile_b, 8), _round_up(B, 8)))
    b_pad = _round_up(B, tile_b)
    if b_pad != B:
        s2 = jnp.pad(s2, ((0, b_pad - B), (0, 0)))
        a2 = jnp.pad(a2, ((0, b_pad - B), (0, 0)))

    grid = (b_pad // tile_b,)

    out = pl.pallas_call(
        critic_kernel,
        out_shape=jax.ShapeDtypeStruct((b_pad, 1), jnp.float32),
        grid=grid,
        in_specs=[
            pl.BlockSpec((tile_b, s_dim), lambda i: (i, 0)),   # s   — tiled over batch
            pl.BlockSpec((tile_b, a_dim), lambda i: (i, 0)),   # a   — tiled over batch
            pl.BlockSpec((s_dim, H), lambda i: (0, 0)),        # W1[:s_dim]  (resident)
            pl.BlockSpec((a_dim, H), lambda i: (0, 0)),        # W1[s_dim:]  (resident)
            pl.BlockSpec((1, H), lambda i: (0, 0)),            # b1
            pl.BlockSpec((H, H), lambda i: (0, 0)),            # W2
            pl.BlockSpec((1, H), lambda i: (0, 0)),            # b2
            pl.BlockSpec((1, H), lambda i: (0, 0)),            # w3 as a row
            pl.BlockSpec(memory_space=pltpu.MemorySpace.SMEM), # b3 scalar in SMEM
        ],
        out_specs=pl.BlockSpec((tile_b, 1), lambda i: (i, 0)),
        compiler_params=pltpu.CompilerParams(
            dimension_semantics=("parallel",)),   # batch axis — megacore-shardable
    )(s2, a2, w1s, w1a, b1r, w2f, b2r, w3r, b3s)

    return out[:B]


def init_critic_params(key, s_dim, a_dim, hidden_dim):
    """Deterministic init mirroring nn.Linear default U(-1/sqrt(fan_in), 1/sqrt(fan_in))."""
    d_in = s_dim + a_dim
    ks = jax.random.split(key, 6)

    def linear(kw, kb, fan_in, fan_out):
        bound = 1.0 / jnp.sqrt(jnp.asarray(fan_in, jnp.float32))
        w = jax.random.uniform(kw, (fan_in, fan_out), jnp.float32, -bound, bound)
        b = jax.random.uniform(kb, (1, fan_out), jnp.float32, -bound, bound)
        return w, b

    w1, b1 = linear(ks[0], ks[1], d_in, hidden_dim)
    w2, b2 = linear(ks[2], ks[3], hidden_dim, hidden_dim)
    w3, b3 = linear(ks[4], ks[5], hidden_dim, 1)
    return (w1, b1, w2, b2, w3, b3)


def critic_reference(s, a, params, *, s_dim, a_dim):
    """Pure-JAX reference. Algebraically identical to the PyTorch forward:
    cat([s,a],1) @ W1 == s @ W1[:s_dim] + a @ W1[s_dim:], and h2 @ W3 == sum(h2 * W3.T, -1)."""
    w1, b1, w2, b2, w3, b3 = params
    s2 = s.reshape(-1, s_dim).astype(jnp.float32)
    a2 = a.reshape(-1, a_dim).astype(jnp.float32)
    h1 = jnp.maximum(s2 @ w1[:s_dim] + a2 @ w1[s_dim:] + b1, 0.0)
    h2 = jnp.maximum(h1 @ w2 + b2, 0.0)
    return jnp.sum(h2 * w3.reshape(1, -1), axis=-1, keepdims=True) + b3.reshape(1, 1)


if __name__ == "__main__":
    # Small shapes consistent with the module: state dim 12, action dim 4, hidden 32.
    S_DIM, A_DIM, HIDDEN, BATCH = 12, 4, 32, 8

    key = jax.random.PRNGKey(0)
    k_s, k_a, k_p, k_s2, k_a2 = jax.random.split(key, 5)

    params = init_critic_params(k_p, S_DIM, A_DIM, HIDDEN)

    # --- Test 1: tiny batch (single grid step, tile clamped to the batch). ---
    s = jax.random.normal(k_s, (BATCH, S_DIM), jnp.float32)
    a = jax.random.normal(k_a, (BATCH, A_DIM), jnp.float32)
    out = critic_forward(s, a, params, s_dim=S_DIM, a_dim=A_DIM)
    out = jax.block_until_ready(out)
    ref = critic_reference(s, a, params, s_dim=S_DIM, a_dim=A_DIM)
    assert out.shape == (BATCH, 1), out.shape
    assert jnp.allclose(out, ref, atol=1e-4, rtol=1e-4), (out, ref)

    # --- Test 2: ragged batch exercising padding + a multi-step parallel grid. ---
    B2 = 300
    s_big = jax.random.normal(k_s2, (B2, S_DIM), jnp.float32)
    a_big = jax.random.normal(k_a2, (B2, A_DIM), jnp.float32)
    out2 = critic_forward(s_big, a_big, params, s_dim=S_DIM, a_dim=A_DIM, tile_b=128)
    out2 = jax.block_until_ready(out2)
    ref2 = critic_reference(s_big, a_big, params, s_dim=S_DIM, a_dim=A_DIM)
    assert out2.shape == (B2, 1), out2.shape
    assert jnp.allclose(out2, ref2, atol=1e-4, rtol=1e-4), (out2, ref2)

    print("KERNEL_OK")
</pallas_src>

<mosaic_0001>
module attributes {stable_mosaic.version = 11 : i64} {
  func.func @critic_kernel(%arg0: i32, %arg1: memref<8x12xf32, #tpu.memory_space<vmem>>, %arg2: memref<8x4xf32, #tpu.memory_space<vmem>>, %arg3: memref<12x32xf32, #tpu.memory_space<vmem>>, %arg4: memref<4x32xf32, #tpu.memory_space<vmem>>, %arg5: memref<1x32xf32, #tpu.memory_space<vmem>>, %arg6: memref<32x32xf32, #tpu.memory_space<vmem>>, %arg7: memref<1x32xf32, #tpu.memory_space<vmem>>, %arg8: memref<1x32xf32, #tpu.memory_space<vmem>>, %arg9: memref<1x1xf32, #tpu.memory_space<smem>>, %arg10: memref<8x1xf32, #tpu.memory_space<vmem>>) attributes {dimension_semantics = [#tpu.dimension_semantics<parallel>], iteration_bounds = array<i64: 1>, scalar_prefetch = 0 : i64, scratch_operands = 0 : i64, tpu.core_type = #tpu.core_type<tc>, window_params = [{transform_indices = @transform_0, window_bounds = array<i64: 8, 12>}, {transform_indices = @transform_1, window_bounds = array<i64: 8, 4>}, {pipeline_mode = #tpu.pipeline_mode<synchronous>, transform_indices = @transform_2, window_bounds = array<i64: 12, 32>}, {pipeline_mode = #tpu.pipeline_mode<synchronous>, transform_indices = @transform_3, window_bounds = array<i64: 4, 32>}, {pipeline_mode = #tpu.pipeline_mode<synchronous>, transform_indices = @transform_4, window_bounds = array<i64: 1, 32>}, {pipeline_mode = #tpu.pipeline_mode<synchronous>, transform_indices = @transform_5, window_bounds = array<i64: 32, 32>}, {pipeline_mode = #tpu.pipeline_mode<synchronous>, transform_indices = @transform_6, window_bounds = array<i64: 1, 32>}, {pipeline_mode = #tpu.pipeline_mode<synchronous>, transform_indices = @transform_7, window_bounds = array<i64: 1, 32>}, {transform_indices = @transform_8, window_bounds = array<i64: 1, 1>}, {transform_indices = @transform_9, window_bounds = array<i64: 8, 1>}]} {
    %c0 = arith.constant 0 : index
    %c0_0 = arith.constant 0 : index
    %0 = vector.load %arg1[%c0, %c0_0] : memref<8x12xf32, #tpu.memory_space<vmem>>, vector<8x12xf32>
    %c0_1 = arith.constant 0 : index
    %c0_2 = arith.constant 0 : index
    %1 = vector.load %arg3[%c0_1, %c0_2] : memref<12x32xf32, #tpu.memory_space<vmem>>, vector<12x32xf32>
    %cst = arith.constant dense<0.000000e+00> : vector<8x32xf32>
    %2 = tpu.matmul %0, %1, %cst {dimension_numbers = #tpu.dot_dimension_numbers<[1], [0], [0], [1], [0, 0, 1, 1], [], []>} : vector<8x12xf32>, vector<12x32xf32>, vector<8x32xf32> -> vector<8x32xf32>
    %c0_3 = arith.constant 0 : index
    %c0_4 = arith.constant 0 : index
    %3 = vector.load %arg2[%c0_3, %c0_4] : memref<8x4xf32, #tpu.memory_space<vmem>>, vector<8x4xf32>
    %c0_5 = arith.constant 0 : index
    %c0_6 = arith.constant 0 : index
    %4 = vector.load %arg4[%c0_5, %c0_6] : memref<4x32xf32, #tpu.memory_space<vmem>>, vector<4x32xf32>
    %cst_7 = arith.constant dense<0.000000e+00> : vector<8x32xf32>
    %5 = tpu.matmul %3, %4, %cst_7 {dimension_numbers = #tpu.dot_dimension_numbers<[1], [0], [0], [1], [0, 0, 1, 1], [], []>} : vector<8x4xf32>, vector<4x32xf32>, vector<8x32xf32> -> vector<8x32xf32>
    %6 = arith.addf %2, %5 : vector<8x32xf32>
    %c0_8 = arith.constant 0 : index
    %c0_9 = arith.constant 0 : index
    %7 = vector.load %arg5[%c0_8, %c0_9] : memref<1x32xf32, #tpu.memory_space<vmem>>, vector<1x32xf32>
    %8 = vector.broadcast %7 : vector<1x32xf32> to vector<8x32xf32>
    %9 = arith.addf %6, %8 : vector<8x32xf32>
    %cst_10 = arith.constant 0.000000e+00 : f32
    %10 = vector.broadcast %cst_10 : f32 to vector<8x32xf32>
    %11 = arith.maximumf %9, %10 : vector<8x32xf32>
    %c0_11 = arith.constant 0 : index
    %c0_12 = arith.constant 0 : index
    %12 = vector.load %arg6[%c0_11, %c0_12] : memref<32x32xf32, #tpu.memory_space<vmem>>, vector<32x32xf32>
    %cst_13 = arith.constant dense<0.000000e+00> : vector<8x32xf32>
    %13 = tpu.matmul %11, %12, %cst_13 {dimension_numbers = #tpu.dot_dimension_numbers<[1], [0], [0], [1], [0, 0, 1, 1], [], []>} : vector<8x32xf32>, vector<32x32xf32>, vector<8x32xf32> -> vector<8x32xf32>
    %c0_14 = arith.constant 0 : index
    %c0_15 = arith.constant 0 : index
    %14 = vector.load %arg7[%c0_14, %c0_15] : memref<1x32xf32, #tpu.memory_space<vmem>>, vector<1x32xf32>
    %15 = vector.broadcast %14 : vector<1x32xf32> to vector<8x32xf32>
    %16 = arith.addf %13, %15 : vector<8x32xf32>
    %cst_16 = arith.constant 0.000000e+00 : f32
    %17 = vector.broadcast %cst_16 : f32 to vector<8x32xf32>
    %18 = arith.maximumf %16, %17 : vector<8x32xf32>
    %c0_17 = arith.constant 0 : index
    %c0_18 = arith.constant 0 : index
    %19 = vector.load %arg8[%c0_17, %c0_18] : memref<1x32xf32, #tpu.memory_space<vmem>>, vector<1x32xf32>
    %20 = vector.broadcast %19 : vector<1x32xf32> to vector<8x32xf32>
    %21 = arith.mulf %18, %20 : vector<8x32xf32>
    %cst_19 = arith.constant dense<0.000000e+00> : vector<8xf32>
    %22 = vector.multi_reduction <add>, %21, %cst_19 [1] : vector<8x32xf32> to vector<8xf32>
    %23 = vector.shape_cast %22 : vector<8xf32> to vector<8x1xf32>
    %c0_20 = arith.constant 0 : index
    %c0_21 = arith.constant 0 : index
    %24 = memref.load %arg9[%c0_20, %c0_21] : memref<1x1xf32, #tpu.memory_space<smem>>
    %25 = vector.broadcast %24 : f32 to vector<8x1xf32>
    %26 = arith.addf %23, %25 : vector<8x1xf32>
    %c0_22 = arith.constant 0 : index
    %c0_23 = arith.constant 0 : index
    %27 = vector.load %arg10[%c0_22, %c0_23] : memref<8x1xf32, #tpu.memory_space<vmem>>, vector<8x1xf32>
    tpu.vector_store %arg10[%c0_22, %c0_23], %26 {strides = array<i32>} : memref<8x1xf32, #tpu.memory_space<vmem>>, vector<8x1xf32>,
    return
  }
  func.func @transform_0(%arg0: i32) -> (i32, i32) {
    %c0_i32 = arith.constant 0 : i32
    %c0_i32_0 = arith.constant 0 : i32
    return %arg0, %c0_i32 : i32, i32
  }
  func.func @transform_1(%arg0: i32) -> (i32, i32) {
    %c0_i32 = arith.constant 0 : i32
    %c0_i32_0 = arith.constant 0 : i32
    return %arg0, %c0_i32 : i32, i32
  }
  func.func @transform_2(%arg0: i32) -> (i32, i32) {
    %c0_i32 = arith.constant 0 : i32
    %c0_i32_0 = arith.constant 0 : i32
    %c0_i32_1 = arith.constant 0 : i32
    return %c0_i32, %c0_i32_0 : i32, i32
  }
  func.func @transform_3(%arg0: i32) -> (i32, i32) {
    %c0_i32 = arith.constant 0 : i32
    %c0_i32_0 = arith.constant 0 : i32
    %c0_i32_1 = arith.constant 0 : i32
    return %c0_i32, %c0_i32_0 : i32, i32
  }
  func.func @transform_4(%arg0: i32) -> (i32, i32) {
    %c0_i32 = arith.constant 0 : i32
    %c0_i32_0 = arith.constant 0 : i32
    %c0_i32_1 = arith.constant 0 : i32
    return %c0_i32, %c0_i32_0 : i32, i32
  }
  func.func @transform_5(%arg0: i32) -> (i32, i32) {
    %c0_i32 = arith.constant 0 : i32
    %c0_i32_0 = arith.constant 0 : i32
    %c0_i32_1 = arith.constant 0 : i32
    return %c0_i32, %c0_i32_0 : i32, i32
  }
  func.func @transform_6(%arg0: i32) -> (i32, i32) {
    %c0_i32 = arith.constant 0 : i32
    %c0_i32_0 = arith.constant 0 : i32
    %c0_i32_1 = arith.constant 0 : i32
    return %c0_i32, %c0_i32_0 : i32, i32
  }
  func.func @transform_7(%arg0: i32) -> (i32, i32) {
    %c0_i32 = arith.constant 0 : i32
    %c0_i32_0 = arith.constant 0 : i32
    %c0_i32_1 = arith.constant 0 : i32
    return %c0_i32, %c0_i32_0 : i32, i32
  }
  func.func @transform_8(%arg0: i32) -> (i32, i32) {
    %c0_i32 = arith.constant 0 : i32
    %c0_i32_0 = arith.constant 0 : i32
    %c0_i32_1 = arith.constant 0 : i32
    return %c0_i32, %c0_i32_0 : i32, i32
  }
  func.func @transform_9(%arg0: i32) -> (i32, i32) {
    %c0_i32 = arith.constant 0 : i32
    %c0_i32_0 = arith.constant 0 : i32
    return %arg0, %c0_i32 : i32, i32
  }
}

</mosaic_0001>

<bundles_post_ra>
// kernel: tpu_custom_call.1
= control target key start
LH: loop header
LB: loop body
LE: loop exit
PB: predicated region body
PF: predicated region fallthrough
CT: control target
= control target key end

     0   :  { %15 = vsyncpa [#allocation4], 0  ;;  %s549_s0 = inlined_call_operand.hbm [shape: f32[8,12], index: 0, kind: input, shape index: {}]   ;;  %s550_s1 = inlined_call_operand.vmem [shape: f32[8,4], index: 1, kind: input, shape index: {}]   ;;  %s551_s2 = inlined_call_operand.vmem [shape: f32[12,32], index: 2, kind: input, shape index: {}]   ;;  %s552_s3 = inlined_call_operand.hbm [shape: f32[4,32], index: 3, kind: input, shape index: {}]   ;;  %s553_s4 = inlined_call_operand.vmem [shape: f32[1,32], index: 4, kind: input, shape index: {}]   ;;  %s554_s5 = inlined_call_operand.hbm [shape: f32[32,32], index: 5, kind: input, shape index: {}]   ;;  %s555_s6 = inlined_call_operand.vmem [shape: f32[1,32], index: 6, kind: input, shape index: {}]   ;;  %s556_s7 = inlined_call_operand.vmem [shape: f32[1,32], index: 7, kind: input, shape index: {}]   ;;  %s557_s8 = inlined_call_operand.<no memory space> [shape: f32[1,1], index: 8, kind: input, shape index: {}]   ;;  %s558_s9 = inlined_call_operand.vmem [shape: f32[8,1], index: 9, kind: output, shape index: {}]  }
   0x1   :  { %16 = vsyncpa [#allocation6], 0  ;;  %s459_s30 = smov [#allocation5]   ;;  %s460_s11 = smov [#allocation3]  }
   0x2   :  { %s37_s10 = sshll.u32 %s459_s30, 4  ;;  %s23_s12 = sshll.u32 %s460_s11, 4  ;;  %s38_s10 = int_to_ptr.vmem [resolvable:$true] %s37_s10  ;;  %s24_s12 = int_to_ptr.vmem [resolvable:$true] %s23_s12 }
   0x3   :  { %s403_s13 = scalar_lea.vmem %s38_s10, 64  ;;  %p408_p1 = scmp.lt.s32.totalorder %s38_s10, %s38_s10 }
   0x4   :  { %p404_p0 = scmp.ne.s32.totalorder %s38_s10, %s403_s13  ;;  %p409_p2 = scmp.lt.s32.totalorder %s403_s13, %s403_s13 }
   0x6   :  { %p410_p3 = por %p409_p2, %p408_p1 }
   0x8   :  { %p411_p4 = pnand %p410_p3, %p404_p0 }
   0xa   :  { %414 = shalt.err (!%p411_p4)
}
   0xb   :  { %40 = dma.hbm_to_vmem [thread:$0]  %s552_s3, 64, %s38_s10, [#allocation6]  }
   0xc   :  { %s423_s16 = scalar_lea.vmem %s24_s12, 128  ;;  %p428_p6 = scmp.lt.s32.totalorder %s24_s12, %s24_s12 }
   0xd   :  { %p424_p5 = scmp.ne.s32.totalorder %s24_s12, %s423_s16  ;;  %p429_p7 = scmp.lt.s32.totalorder %s423_s16, %s423_s16 }
   0xf   :  { %p430_p8 = por %p429_p7, %p428_p6 }
  0x11   :  { %p431_p9 = pnand %p430_p8, %p424_p5 }
  0x13   :  { %434 = shalt.err (!%p431_p9)
}
  0x14   :  { %26 = dma.hbm_to_vmem [thread:$0]  %s549_s0, 128, %s24_s12, [#allocation4]  }
  0x15   :  { %s461_s19 = smov [#allocation7]  }
  0x16   :  { %s48_s20 = sshll.u32 %s461_s19, 4  ;;  %s49_s20 = int_to_ptr.vmem [resolvable:$true] %s48_s20 }
  0x17   :  { %s443_s21 = scalar_lea.vmem %s49_s20, 512  ;;  %p448_p11 = scmp.lt.s32.totalorder %s49_s20, %s49_s20 }
  0x18   :  { %p444_p10 = scmp.ne.s32.totalorder %s49_s20, %s443_s21  ;;  %p449_p12 = scmp.lt.s32.totalorder %s443_s21, %s443_s21 }
  0x1a   :  { %p450_p13 = por %p449_p12, %p448_p11 }
  0x1c   :  { %p451_p0 = pnand %p450_p13, %p444_p10 }
  0x1e   :  { %454 = shalt.err (!%p451_p0)
}
  0x1f   :  { %s462_s3 = smov 128   ;;  %s463_s22 = smov 8  }
  0x20   :  { %54 = dma.hbm_to_vmem [thread:$0]  %s554_s5, 512, %s49_s20, [#allocation6], %s462_s3, %s462_s3, %s463_s22  }
  0x21   :  { %455 = dma.done.wait [#allocation4], 128  }
  0x22   :  { %456 = vsyncadd [#allocation4], 4294967168 }
  0x23   :  { %457 = dma.done.wait [#allocation6], 576  }
  0x24   :  { %458 = vsyncadd [#allocation6], 4294966720  ;;  %v464_v0 = vmov 0.0   ;;  %vm465_vm0 = vmmov 0   ;;  %vm79_vm1 = vcmask 1043456   ;;  %vm75_vm2 = vcmask 31744  }
  0x25   :  { %365 = vmatprep.subr.mxu1 %v464_v0  ;;  %367 = vmatprep.mubr.msk.f32.mxu1 %vm465_vm0, %v464_v0  ;;  %v74_v1 = vld [vmem:[#allocation5] sm:$0xf]  ;;  %v73_v2 = vld [vmem:[%s550_s1] sm:$0xff]  ;;  %vm153_vm3 = vcmask 97280   ;;  %v240_v8 = vld [vmem:[#allocation7 + $0x8] sm:$0xff]  ;;  %vm250_vm4 = vcmask 261120   ;;  %v337_v26 = vstv %s557_s8 }
  0x26   :  { %377 = vmatprep.subr.mxu0 %v464_v0  ;;  %385 = vmatprep.mubr.msk.f32.mxu0 %vm465_vm0, %v464_v0  ;;  %v72_v3 = vld [vmem:[%s551_s2 + $0x8] sm:$0xf]  ;;  %v71_v4 = vld [vmem:[%s551_s2] sm:$0xff]  ;;  %v239_v9 = vld [vmem:[#allocation7] sm:$0xff]  ;;  %vm339_vm5 = vcmask 7168  }
  0x27   :  { %366 = vmatpush3.msk.msra.mxu1 %vm79_vm1, %v74_v1  ;;  %v70_v5 = vld [vmem:[#allocation3] sm:$0xff] }
  0x28   :  { %368 = vmatmul.mubr.msk.f32.vlgmr.msra.gmra.mxu1 %vm75_vm2, %v73_v2  ;;  %370 = vmatprep.subr.mxu1 %v464_v0  ;;  %v242_v6 = vld [vmem:[#allocation7 + $0x18] sm:$0xff]  ;;  %v241_v7 = vld [vmem:[#allocation7 + $0x10] sm:$0xff] }
  0x29   :  { %371 = vmatpush3.msk.msra.mxu1 %vm79_vm1, %v72_v3  ;;  %374 = vmatprep.mubr.msk.f32.mxu1 %vm465_vm0, %v464_v0  ;;  %v351_v13 = vld [vmem:[%s553_s4] ss:$0 sm:$0xff] }
  0x2a   :  { %372 = vmatprep.subr.mxu1 %v464_v0  ;;  %378 = vmatpush3.msra.mxu0 %v242_v6  ;;  %v352_v18 = vld [vmem:[%s555_s6] ss:$0 sm:$0xff] }
  0x2b   :  { %373 = vmatpush3.msra.mxu1 %v71_v4  ;;  %379 = vmatprep.subr.mxu0 %v464_v0  ;;  %v354_v22 = vld [vmem:[%s556_s7] ss:$0 sm:$0xff] }
  0x2c   :  { %375 = vmatmul.mubr.msk.f32.vlgmr.msra.gmra.mxu1 %vm153_vm3, %v70_v5  ;;  %380 = vmatpush3.msra.mxu0 %v241_v7 }
  0x2d   :  { %381 = vmatprep.subr.mxu0 %v464_v0 }
  0x2e   :  { %382 = vmatpush3.msra.mxu0 %v240_v8 }
  0x2f   :  { %383 = vmatprep.subr.mxu0 %v464_v0 }
  0x30   :  { %384 = vmatpush3.msra.mxu0 %v239_v9 }
  0xe8   :  { %v149_v10 = vpop.f32.mrf.mxu1 }
  0xea   :  { %v369_v11 = vpop.f32.mrf.mxu1 }
  0xec   :  { %v226_v12 = vpop.f32.mrf.mxu1 }
  0xed   :  { %v227_v14 = vadd.f32 %v226_v12, %v149_v10 }
  0xee   :  { %v376_v15 = vpop.f32.mrf.mxu1 }
  0xef   :  { %v237_v16 = vadd.f32 %v351_v13, %v227_v14 }
  0xf1   :  { %v238_v17 = vmax.f32 %v237_v16, 0.0 }
  0xf3   :  { %386 = vmatmul.mubr.msk.f32.vlgmr.msra.gmra.mxu0 %vm250_vm4, %v238_v17 }
 0x1b3   :  { %v320_v19 = vpop.f32.mrf.mxu0 }
 0x1b4   :  { %v321_v20 = vadd.f32 %v352_v18, %v320_v19 }
 0x1b5   :  { %v387_v21 = vpop.f32.mrf.mxu0 }
 0x1b6   :  { %v324_v23 = vmax.f32 %v321_v20, 0.0 }
 0x1b8   :  { %v332_v24 = vmul.f32 %v354_v22, %v324_v23 }
 0x1ba   :  { %v333_v25 = vsel %vm250_vm4, %v332_v24, 0.0 }
 0x1bb   :  { %334 = vadd.xlane.f32.xlu0 %v333_v25 }
 0x244   :  { %v335_v27 = vpop.xlane.xlu0 %334 }
 0x245   :  { %v338_v28 = vadd.f32 %v337_v26, %v335_v27 }
 0x247   :  { %340 = vst.msk [vmem:[%s558_s9] sm:$0xff] %vm339_vm5, %v338_v28 }
 0x248   :  { %345 = vsyncpa [#allocation4], 1 }
 0x249   :  { %346 = vsyncpa [#allocation6], 1 }

</bundles_post_ra>
